<compile_context>
chip_gen: v7x
topology: tpu7x:2x2x1
jax: 0.10.0
libtpu: 0.0.40
codegen_flags: <defaults>
</compile_context>

<pallas_src>
import jax
import jax.numpy as jnp
from jax.experimental import pallas as pl
from jax.experimental.pallas import tpu as pltpu


def resnet_basic_stem_forward(x, params, kernel, stride, padding, eps=1e-5,
                              matmul_dtype=jnp.bfloat16):
    N, Cin, T, H, W = x.shape
    Kt, Kh, Kw = kernel
    st, sh, sw = stride
    pt, ph, pw = padding
    w = params["conv_w"]                      # (Cout, Cin, Kt, Kh, Kw)
    Cout = w.shape[0]

    assert (sh, sw) == (2, 2), "stem kernels assume spatial stride 2"
    assert H % 2 == 0 and W % 2 == 0, "even spatial input assumed"

    To = (T + 2 * pt - Kt) // st + 1
    Ho = (H + 2 * ph - Kh) // sh + 1
    Wo = (W + 2 * pw - Kw) // sw + 1
    # pool pairing (and the free pool reshape) assumes even conv-output H/W,
    # which holds for the standard stem configs (e.g. 112x112).
    assert Ho % 2 == 0 and Wo % 2 == 0

    Cp = ((Cout + 127) // 128) * 128          # lane-dense padded channel count
    Tp, Hp, Wp = T + 2 * pt, H + 2 * ph, W + 2 * pw
    PH, PW = Hp // 2, Wp // 2                 # (2,2) space-to-depth extents
    C4 = 4 * Cin                              # phase channels per s2d pixel
    ndh, ndw = (Kh + 1) // 2, (Kw + 1) // 2   # phase-row / phase-col tap offsets
    n_blk = Kt * ndh                          # matmuls per conv output row
    Kblk = ndw * C4                           # contraction size per matmul
    inter_dtype = matmul_dtype                # lane-dense conv intermediate dtype

    # ------------- wrapper glue (operates only on the small input) -------------
    x_cl = jnp.transpose(x, (0, 2, 3, 4, 1))                          # (N,T,H,W,Cin)
    xp = jnp.pad(x_cl, ((0, 0), (pt, pt), (ph, ph), (pw, pw), (0, 0)))
    x_s2d = xp.reshape(N, Tp, PH, 2, PW, 2, Cin)
    x_s2d = jnp.transpose(x_s2d, (0, 1, 2, 4, 3, 5, 6)).reshape(N, Tp, PH, PW, C4)
    # Pre-concatenate the +dw phase-column neighbours so the in-kernel contraction
    # is one unit-stride slice of width Kblk (no strided access, no lane concat).
    shifted = []
    for dwi in range(ndw):
        if dwi == 0:
            shifted.append(x_s2d)
        else:
            tail = jnp.zeros_like(x_s2d[:, :, :, :dwi, :])
            shifted.append(jnp.concatenate([x_s2d[:, :, :, dwi:, :], tail], axis=3))
    x_s2dx = jnp.concatenate(shifted, axis=-1).astype(matmul_dtype)   # (N,Tp,PH,PW,Kblk)

    # Weights reordered to phase space: block (kt, dh) of shape (Kblk, Cp) with
    # rows ordered (dw, row-phase, col-phase, cin); rows for kh/kw beyond the
    # kernel extent are zero.
    w_t = jnp.transpose(w, (2, 3, 4, 1, 0))                           # (Kt,Kh,Kw,Cin,Cout)
    w_t = jnp.pad(w_t, ((0, 0), (0, 2 * ndh - Kh), (0, 2 * ndw - Kw), (0, 0), (0, 0)))
    w_t = w_t.reshape(Kt, ndh, 2, ndw, 2, Cin, Cout)
    w_t = jnp.transpose(w_t, (0, 1, 3, 2, 4, 5, 6))                   # (Kt,ndh,ndw,2,2,Cin,Cout)
    w_blk = w_t.reshape(n_blk, Kblk, Cout)
    w_blk = jnp.pad(w_blk, ((0, 0), (0, 0), (0, Cp - Cout))).astype(matmul_dtype)

    # Fold inference-mode BN into per-channel scale/shift (f32, lane-padded).
    gamma, beta = params["bn_gamma"], params["bn_beta"]
    mean, var = params["bn_mean"], params["bn_var"]
    inv_std = 1.0 / jnp.sqrt(var + eps)
    bn_scale = jnp.pad(gamma * inv_std, (0, Cp - Cout)).reshape(1, Cp).astype(jnp.float32)
    bn_shift = jnp.pad(beta - mean * gamma * inv_std,
                       (0, Cp - Cout)).reshape(1, Cp).astype(jnp.float32)

    # ------------------- kernel 1: fused conv + BN + ReLU ----------------------
    def conv_kernel(*refs):
        x_refs = refs[:Kt]                                  # Kt temporal taps
        w_ref, scale_ref, shift_ref = refs[Kt], refs[Kt + 1], refs[Kt + 2]
        o_ref = refs[Kt + 3]
        sc = scale_ref[...]                                 # (1, Cp) f32
        sf = shift_ref[...]
        wb = [w_ref[i] for i in range(n_blk)]               # hoisted (Kblk, Cp) tiles

        def row_body(ho, carry):
            acc = jnp.zeros((Wo, Cp), jnp.float32)
            for kt in range(Kt):
                for dh in range(ndh):
                    piece = x_refs[kt][0, 0, ho + dh, pl.ds(0, Wo), :]   # (Wo, Kblk)
                    acc = acc + jnp.dot(piece, wb[kt * ndh + dh],
                                        preferred_element_type=jnp.float32)
            y = jnp.maximum(acc * sc + sf, 0.0)             # folded BN + ReLU
            o_ref[0, 0, ho] = y.astype(o_ref.dtype)         # lane-dense (Wo, Cp) row
            return carry

        jax.lax.fori_loop(0, Ho, row_body, 0)

    x_specs = [
        pl.BlockSpec((1, 1, PH, PW, Kblk),
                     lambda n, t, _kt=kt: (n, t * st + _kt, 0, 0, 0))
        for kt in range(Kt)
    ]
    y_conv = pl.pallas_call(
        conv_kernel,
        out_shape=jax.ShapeDtypeStruct((N, To, Ho, Wo, Cp), inter_dtype),
        grid=(N, To),
        in_specs=x_specs + [
            pl.BlockSpec((n_blk, Kblk, Cp), lambda n, t: (0, 0, 0)),
            pl.BlockSpec((1, Cp), lambda n, t: (0, 0)),
            pl.BlockSpec((1, Cp), lambda n, t: (0, 0)),
        ],
        out_specs=pl.BlockSpec((1, 1, Ho, Wo, Cp), lambda n, t: (n, t, 0, 0, 0)),
        compiler_params=pltpu.CompilerParams(
            dimension_semantics=("parallel", "parallel"),
            vmem_limit_bytes=32 * 1024 * 1024),
    )(*([x_s2dx] * Kt), w_blk, bn_scale, bn_shift)

    # ------- kernel 2: MaxPool3d([1,3,3], stride [1,2,2], padding [0,1,1]) -----
    NT = N * To
    Hh, Wh = Ho // 2, Wo // 2
    # Free reshape (same linear layout): row/col parities become an explicit axis
    # and a lane pair, so the kernel needs no strided access and no extra copies.
    y_pairs = y_conv.reshape(NT, Hh, 2, Wh, 2 * Cp)

    bytes_per_frame = Ho * Wo * Cp * jnp.dtype(inter_dtype).itemsize
    tblk = 1
    for cand in range(1, NT + 1):
        if (NT % cand == 0 and cand * bytes_per_frame <= (2 << 20)
                and NT // cand >= min(2, NT)):
            tblk = cand                                     # many frames per step

    def pool_kernel(x_ref, o_ref):
        ye = x_ref[:, :, 0, :, :Cp]     # conv(2p,   2q)
        yeo = x_ref[:, :, 0, :, Cp:]    # conv(2p,   2q+1)
        yoe = x_ref[:, :, 1, :, :Cp]    # conv(2p+1, 2q)
        yoo = x_ref[:, :, 1, :, Cp:]    # conv(2p+1, 2q+1)

        def shift_cols(z):  # value at pooled col q-1; zero-pad is safe (y >= 0)
            return jnp.concatenate(
                [jnp.zeros_like(z[:, :, :1, :]), z[:, :, :-1, :]], axis=2)

        def shift_rows(z):  # value at pooled row p-1
            return jnp.concatenate(
                [jnp.zeros_like(z[:, :1]), z[:, :-1]], axis=1)

        row_e = jnp.maximum(jnp.maximum(ye, yeo), shift_cols(yeo))   # conv row 2p
        row_o = jnp.maximum(jnp.maximum(yoe, yoo), shift_cols(yoo))  # conv row 2p+1
        o_ref[...] = jnp.maximum(jnp.maximum(row_e, row_o), shift_rows(row_o))

    pooled = pl.pallas_call(
        pool_kernel,
        out_shape=jax.ShapeDtypeStruct((NT, Hh, Wh, Cp), inter_dtype),
        grid=(NT // tblk,),
        in_specs=[pl.BlockSpec((tblk, Hh, 2, Wh, 2 * Cp), lambda i: (i, 0, 0, 0, 0))],
        out_specs=pl.BlockSpec((tblk, Hh, Wh, Cp), lambda i: (i, 0, 0, 0)),
        compiler_params=pltpu.CompilerParams(
            dimension_semantics=("parallel",),
            vmem_limit_bytes=32 * 1024 * 1024),
    )(y_pairs)

    out = pooled[..., :Cout].reshape(N, To, Hh, Wh, Cout)
    return jnp.transpose(out, (0, 4, 1, 2, 3)).astype(jnp.float32)   # NCDHW


# ---------------------------------------------------------------------------
# Pure-JAX reference for correctness checking
# ---------------------------------------------------------------------------
def _reference(x, params, kernel, stride, padding, eps):
    y = jax.lax.conv_general_dilated(
        x, params["conv_w"], window_strides=stride,
        padding=[(padding[0],) * 2, (padding[1],) * 2, (padding[2],) * 2],
        dimension_numbers=("NCDHW", "OIDHW", "NCDHW"))
    g = params["bn_gamma"][None, :, None, None, None]
    b = params["bn_beta"][None, :, None, None, None]
    m = params["bn_mean"][None, :, None, None, None]
    v = params["bn_var"][None, :, None, None, None]
    y = (y - m) / jnp.sqrt(v + eps) * g + b
    y = jnp.maximum(y, 0.0)
    y = jax.lax.reduce_window(
        y, -jnp.inf, jax.lax.max,
        window_dimensions=(1, 1, 1, 3, 3),
        window_strides=(1, 1, 1, 2, 2),
        padding=((0, 0), (0, 0), (0, 0), (1, 1), (1, 1)))
    return y


if __name__ == "__main__":
    key = jax.random.PRNGKey(0)
    k1, k2, k3, k4, k5, k6 = jax.random.split(key, 6)

    # Small shapes consistent with the stem: RGB video input, 8 output channels.
    N, Cin, T, H, W = 2, 3, 4, 16, 16
    Cout = 8
    kernel = (3, 3, 3)
    stride = (1, 2, 2)
    padding = (1, 1, 1)
    eps = 1e-5

    x = jax.random.normal(k1, (N, Cin, T, H, W), jnp.float32)
    params = dict(
        conv_w=jax.random.normal(k2, (Cout, Cin) + kernel, jnp.float32) * 0.1,
        bn_gamma=jax.random.uniform(k3, (Cout,), jnp.float32, 0.5, 1.5),
        bn_beta=jax.random.normal(k4, (Cout,), jnp.float32) * 0.1,
        bn_mean=jax.random.normal(k5, (Cout,), jnp.float32) * 0.1,
        bn_var=jax.random.uniform(k6, (Cout,), jnp.float32, 0.5, 1.5),
    )

    stem = jax.jit(resnet_basic_stem_forward,
                   static_argnames=("kernel", "stride", "padding", "eps",
                                    "matmul_dtype"))
    ref = _reference(x, params, kernel, stride, padding, eps)

    # Exact path (f32 MXU operands) — tight tolerance.
    out_f32 = stem(x, params, kernel=kernel, stride=stride, padding=padding,
                   eps=eps, matmul_dtype=jnp.float32)
    out_f32 = jax.block_until_ready(out_f32)
    assert out_f32.shape == ref.shape, (out_f32.shape, ref.shape)
    err32 = float(jnp.max(jnp.abs(out_f32 - ref)))
    assert jnp.allclose(out_f32, ref, atol=1e-4, rtol=1e-4), err32

    # bf16 matmul-operand path (per v6e/v7x perf guidance) — bf16 tolerance.
    out_bf16 = stem(x, params, kernel=kernel, stride=stride, padding=padding,
                    eps=eps, matmul_dtype=jnp.bfloat16)
    out_bf16 = jax.block_until_ready(out_bf16)
    assert out_bf16.shape == ref.shape, (out_bf16.shape, ref.shape)
    err16 = float(jnp.max(jnp.abs(out_bf16 - ref)))
    assert jnp.allclose(out_bf16, ref, atol=5e-2, rtol=5e-2), err16

    print("KERNEL_OK")
</pallas_src>

<mosaic_0001>
module attributes {stable_mosaic.version = 11 : i64} {
  func.func @conv_kernel(%arg0: i32, %arg1: i32, %arg2: memref<1x1x9x9x24xf32, #tpu.memory_space<vmem>>, %arg3: memref<1x1x9x9x24xf32, #tpu.memory_space<vmem>>, %arg4: memref<1x1x9x9x24xf32, #tpu.memory_space<vmem>>, %arg5: memref<6x24x128xf32, #tpu.memory_space<vmem>>, %arg6: memref<1x128xf32, #tpu.memory_space<vmem>>, %arg7: memref<1x128xf32, #tpu.memory_space<vmem>>, %arg8: memref<1x1x8x8x128xf32, #tpu.memory_space<vmem>>) attributes {dimension_semantics = [#tpu.dimension_semantics<parallel>, #tpu.dimension_semantics<parallel>], iteration_bounds = array<i64: 2, 4>, scalar_prefetch = 0 : i64, scratch_operands = 0 : i64, tpu.core_type = #tpu.core_type<tc>, window_params = [{transform_indices = @transform_0, window_bounds = array<i64: 1, 1, 9, 9, 24>}, {transform_indices = @transform_1, window_bounds = array<i64: 1, 1, 9, 9, 24>}, {transform_indices = @transform_2, window_bounds = array<i64: 1, 1, 9, 9, 24>}, {pipeline_mode = #tpu.pipeline_mode<synchronous>, transform_indices = @transform_3, window_bounds = array<i64: 6, 24, 128>}, {pipeline_mode = #tpu.pipeline_mode<synchronous>, transform_indices = @transform_4, window_bounds = array<i64: 1, 128>}, {pipeline_mode = #tpu.pipeline_mode<synchronous>, transform_indices = @transform_5, window_bounds = array<i64: 1, 128>}, {transform_indices = @transform_6, window_bounds = array<i64: 1, 1, 8, 8, 128>}]} {
    %c0 = arith.constant 0 : index
    %c0_0 = arith.constant 0 : index
    %0 = vector.load %arg6[%c0, %c0_0] : memref<1x128xf32, #tpu.memory_space<vmem>>, vector<1x128xf32>
    %c0_1 = arith.constant 0 : index
    %c0_2 = arith.constant 0 : index
    %1 = vector.load %arg7[%c0_1, %c0_2] : memref<1x128xf32, #tpu.memory_space<vmem>>, vector<1x128xf32>
    %c0_3 = arith.constant 0 : index
    %c0_4 = arith.constant 0 : index
    %c0_5 = arith.constant 0 : index
    %2 = vector.load %arg5[%c0_3, %c0_4, %c0_5] : memref<6x24x128xf32, #tpu.memory_space<vmem>>, vector<1x24x128xf32>
    %3 = vector.shape_cast %2 : vector<1x24x128xf32> to vector<24x128xf32>
    %c1 = arith.constant 1 : index
    %c0_6 = arith.constant 0 : index
    %c0_7 = arith.constant 0 : index
    %4 = vector.load %arg5[%c1, %c0_6, %c0_7] : memref<6x24x128xf32, #tpu.memory_space<vmem>>, vector<1x24x128xf32>
    %5 = vector.shape_cast %4 : vector<1x24x128xf32> to vector<24x128xf32>
    %c2 = arith.constant 2 : index
    %c0_8 = arith.constant 0 : index
    %c0_9 = arith.constant 0 : index
    %6 = vector.load %arg5[%c2, %c0_8, %c0_9] : memref<6x24x128xf32, #tpu.memory_space<vmem>>, vector<1x24x128xf32>
    %7 = vector.shape_cast %6 : vector<1x24x128xf32> to vector<24x128xf32>
    %c3 = arith.constant 3 : index
    %c0_10 = arith.constant 0 : index
    %c0_11 = arith.constant 0 : index
    %8 = vector.load %arg5[%c3, %c0_10, %c0_11] : memref<6x24x128xf32, #tpu.memory_space<vmem>>, vector<1x24x128xf32>
    %9 = vector.shape_cast %8 : vector<1x24x128xf32> to vector<24x128xf32>
    %c4 = arith.constant 4 : index
    %c0_12 = arith.constant 0 : index
    %c0_13 = arith.constant 0 : index
    %10 = vector.load %arg5[%c4, %c0_12, %c0_13] : memref<6x24x128xf32, #tpu.memory_space<vmem>>, vector<1x24x128xf32>
    %11 = vector.shape_cast %10 : vector<1x24x128xf32> to vector<24x128xf32>
    %c5 = arith.constant 5 : index
    %c0_14 = arith.constant 0 : index
    %c0_15 = arith.constant 0 : index
    %12 = vector.load %arg5[%c5, %c0_14, %c0_15] : memref<6x24x128xf32, #tpu.memory_space<vmem>>, vector<1x24x128xf32>
    %13 = vector.shape_cast %12 : vector<1x24x128xf32> to vector<24x128xf32>
    %c0_i32 = arith.constant 0 : i32
    %c8_i32 = arith.constant 8 : i32
    %14 = arith.addi %c0_i32, %c8_i32 : i32
    %c1_i32 = arith.constant 1 : i32
    scf.for %arg9 = %c0_i32 to %14 step %c1_i32  : i32 {
      %cst = arith.constant 0.000000e+00 : f32
      %15 = vector.broadcast %cst : f32 to vector<8x128xf32>
      %c0_i32_17 = arith.constant 0 : i32
      %16 = arith.addi %arg9, %c0_i32_17 : i32
      %c0_18 = arith.constant 0 : index
      %c0_19 = arith.constant 0 : index
      %17 = arith.index_cast %16 : i32 to index
      %c0_20 = arith.constant 0 : index
      %c0_21 = arith.constant 0 : index
      %18 = vector.load %arg2[%c0_18, %c0_19, %17, %c0_20, %c0_21] : memref<1x1x9x9x24xf32, #tpu.memory_space<vmem>>, vector<1x1x1x8x24xf32>
      %19 = vector.shape_cast %18 : vector<1x1x1x8x24xf32> to vector<8x24xf32>
      %cst_22 = arith.constant dense<0.000000e+00> : vector<8x128xf32>
      %20 = tpu.matmul %19, %3, %cst_22 {dimension_numbers = #tpu.dot_dimension_numbers<[1], [0], [0], [1], [0, 0, 1, 1], [], []>} : vector<8x24xf32>, vector<24x128xf32>, vector<8x128xf32> -> vector<8x128xf32>
      %21 = arith.addf %15, %20 : vector<8x128xf32>
      %c1_i32_23 = arith.constant 1 : i32
      %22 = arith.addi %arg9, %c1_i32_23 : i32
      %c0_24 = arith.constant 0 : index
      %c0_25 = arith.constant 0 : index
      %23 = arith.index_cast %22 : i32 to index
      %c0_26 = arith.constant 0 : index
      %c0_27 = arith.constant 0 : index
      %24 = vector.load %arg2[%c0_24, %c0_25, %23, %c0_26, %c0_27] : memref<1x1x9x9x24xf32, #tpu.memory_space<vmem>>, vector<1x1x1x8x24xf32>
      %25 = vector.shape_cast %24 : vector<1x1x1x8x24xf32> to vector<8x24xf32>
      %cst_28 = arith.constant dense<0.000000e+00> : vector<8x128xf32>
      %26 = tpu.matmul %25, %5, %cst_28 {dimension_numbers = #tpu.dot_dimension_numbers<[1], [0], [0], [1], [0, 0, 1, 1], [], []>} : vector<8x24xf32>, vector<24x128xf32>, vector<8x128xf32> -> vector<8x128xf32>
      %27 = arith.addf %21, %26 : vector<8x128xf32>
      %c0_i32_29 = arith.constant 0 : i32
      %28 = arith.addi %arg9, %c0_i32_29 : i32
      %c0_30 = arith.constant 0 : index
      %c0_31 = arith.constant 0 : index
      %29 = arith.index_cast %28 : i32 to index
      %c0_32 = arith.constant 0 : index
      %c0_33 = arith.constant 0 : index
      %30 = vector.load %arg3[%c0_30, %c0_31, %29, %c0_32, %c0_33] : memref<1x1x9x9x24xf32, #tpu.memory_space<vmem>>, vector<1x1x1x8x24xf32>
      %31 = vector.shape_cast %30 : vector<1x1x1x8x24xf32> to vector<8x24xf32>
      %cst_34 = arith.constant dense<0.000000e+00> : vector<8x128xf32>
      %32 = tpu.matmul %31, %7, %cst_34 {dimension_numbers = #tpu.dot_dimension_numbers<[1], [0], [0], [1], [0, 0, 1, 1], [], []>} : vector<8x24xf32>, vector<24x128xf32>, vector<8x128xf32> -> vector<8x128xf32>
      %33 = arith.addf %27, %32 : vector<8x128xf32>
      %c1_i32_35 = arith.constant 1 : i32
      %34 = arith.addi %arg9, %c1_i32_35 : i32
      %c0_36 = arith.constant 0 : index
      %c0_37 = arith.constant 0 : index
      %35 = arith.index_cast %34 : i32 to index
      %c0_38 = arith.constant 0 : index
      %c0_39 = arith.constant 0 : index
      %36 = vector.load %arg3[%c0_36, %c0_37, %35, %c0_38, %c0_39] : memref<1x1x9x9x24xf32, #tpu.memory_space<vmem>>, vector<1x1x1x8x24xf32>
      %37 = vector.shape_cast %36 : vector<1x1x1x8x24xf32> to vector<8x24xf32>
      %cst_40 = arith.constant dense<0.000000e+00> : vector<8x128xf32>
      %38 = tpu.matmul %37, %9, %cst_40 {dimension_numbers = #tpu.dot_dimension_numbers<[1], [0], [0], [1], [0, 0, 1, 1], [], []>} : vector<8x24xf32>, vector<24x128xf32>, vector<8x128xf32> -> vector<8x128xf32>
      %39 = arith.addf %33, %38 : vector<8x128xf32>
      %c0_i32_41 = arith.constant 0 : i32
      %40 = arith.addi %arg9, %c0_i32_41 : i32
      %c0_42 = arith.constant 0 : index
      %c0_43 = arith.constant 0 : index
      %41 = arith.index_cast %40 : i32 to index
      %c0_44 = arith.constant 0 : index
      %c0_45 = arith.constant 0 : index
      %42 = vector.load %arg4[%c0_42, %c0_43, %41, %c0_44, %c0_45] : memref<1x1x9x9x24xf32, #tpu.memory_space<vmem>>, vector<1x1x1x8x24xf32>
      %43 = vector.shape_cast %42 : vector<1x1x1x8x24xf32> to vector<8x24xf32>
      %cst_46 = arith.constant dense<0.000000e+00> : vector<8x128xf32>
      %44 = tpu.matmul %43, %11, %cst_46 {dimension_numbers = #tpu.dot_dimension_numbers<[1], [0], [0], [1], [0, 0, 1, 1], [], []>} : vector<8x24xf32>, vector<24x128xf32>, vector<8x128xf32> -> vector<8x128xf32>
      %45 = arith.addf %39, %44 : vector<8x128xf32>
      %c1_i32_47 = arith.constant 1 : i32
      %46 = arith.addi %arg9, %c1_i32_47 : i32
      %c0_48 = arith.constant 0 : index
      %c0_49 = arith.constant 0 : index
      %47 = arith.index_cast %46 : i32 to index
      %c0_50 = arith.constant 0 : index
      %c0_51 = arith.constant 0 : index
      %48 = vector.load %arg4[%c0_48, %c0_49, %47, %c0_50, %c0_51] : memref<1x1x9x9x24xf32, #tpu.memory_space<vmem>>, vector<1x1x1x8x24xf32>
      %49 = vector.shape_cast %48 : vector<1x1x1x8x24xf32> to vector<8x24xf32>
      %cst_52 = arith.constant dense<0.000000e+00> : vector<8x128xf32>
      %50 = tpu.matmul %49, %13, %cst_52 {dimension_numbers = #tpu.dot_dimension_numbers<[1], [0], [0], [1], [0, 0, 1, 1], [], []>} : vector<8x24xf32>, vector<24x128xf32>, vector<8x128xf32> -> vector<8x128xf32>
      %51 = arith.addf %45, %50 : vector<8x128xf32>
      %52 = vector.broadcast %0 : vector<1x128xf32> to vector<8x128xf32>
      %53 = arith.mulf %51, %52 : vector<8x128xf32>
      %54 = vector.broadcast %1 : vector<1x128xf32> to vector<8x128xf32>
      %55 = arith.addf %53, %54 : vector<8x128xf32>
      %cst_53 = arith.constant 0.000000e+00 : f32
      %56 = vector.broadcast %cst_53 : f32 to vector<8x128xf32>
      %57 = arith.maximumf %55, %56 : vector<8x128xf32>
      %c0_54 = arith.constant 0 : index
      %c0_55 = arith.constant 0 : index
      %58 = arith.index_cast %arg9 : i32 to index
      %c0_56 = arith.constant 0 : index
      %c0_57 = arith.constant 0 : index
      %59 = vector.load %arg8[%c0_54, %c0_55, %58, %c0_56, %c0_57] : memref<1x1x8x8x128xf32, #tpu.memory_space<vmem>>, vector<1x1x1x8x128xf32>
      %60 = vector.shape_cast %59 : vector<1x1x1x8x128xf32> to vector<8x128xf32>
      %61 = vector.shape_cast %57 : vector<8x128xf32> to vector<1x1x1x8x128xf32>
      tpu.vector_store %arg8[%c0_54, %c0_55, %58, %c0_56, %c0_57], %61 {strides = array<i32>} : memref<1x1x8x8x128xf32, #tpu.memory_space<vmem>>, vector<1x1x1x8x128xf32>,
    }
    %c8_i32_16 = arith.constant 8 : i32
    return
  }
  func.func @transform_0(%arg0: i32, %arg1: i32) -> (i32, i32, i32, i32, i32) {
    %c1_i32 = arith.constant 1 : i32
    %0 = arith.muli %arg1, %c1_i32 : i32
    %c0_i32 = arith.constant 0 : i32
    %1 = arith.addi %0, %c0_i32 : i32
    %c0_i32_0 = arith.constant 0 : i32
    %c0_i32_1 = arith.constant 0 : i32
    %c0_i32_2 = arith.constant 0 : i32
    %c0_i32_3 = arith.constant 0 : i32
    return %arg0, %1, %c0_i32_0, %c0_i32_1, %c0_i32_2 : i32, i32, i32, i32, i32
  }
  func.func @transform_1(%arg0: i32, %arg1: i32) -> (i32, i32, i32, i32, i32) {
    %c1_i32 = arith.constant 1 : i32
    %0 = arith.muli %arg1, %c1_i32 : i32
    %c1_i32_0 = arith.constant 1 : i32
    %1 = arith.addi %0, %c1_i32_0 : i32
    %c0_i32 = arith.constant 0 : i32
    %c0_i32_1 = arith.constant 0 : i32
    %c0_i32_2 = arith.constant 0 : i32
    %c0_i32_3 = arith.constant 0 : i32
    return %arg0, %1, %c0_i32, %c0_i32_1, %c0_i32_2 : i32, i32, i32, i32, i32
  }
  func.func @transform_2(%arg0: i32, %arg1: i32) -> (i32, i32, i32, i32, i32) {
    %c1_i32 = arith.constant 1 : i32
    %0 = arith.muli %arg1, %c1_i32 : i32
    %c2_i32 = arith.constant 2 : i32
    %1 = arith.addi %0, %c2_i32 : i32
    %c0_i32 = arith.constant 0 : i32
    %c0_i32_0 = arith.constant 0 : i32
    %c0_i32_1 = arith.constant 0 : i32
    %c0_i32_2 = arith.constant 0 : i32
    return %arg0, %1, %c0_i32, %c0_i32_0, %c0_i32_1 : i32, i32, i32, i32, i32
  }
  func.func @transform_3(%arg0: i32, %arg1: i32) -> (i32, i32, i32) {
    %c0_i32 = arith.constant 0 : i32
    %c0_i32_0 = arith.constant 0 : i32
    %c0_i32_1 = arith.constant 0 : i32
    %c0_i32_2 = arith.constant 0 : i32
    return %c0_i32, %c0_i32_0, %c0_i32_1 : i32, i32, i32
  }
  func.func @transform_4(%arg0: i32, %arg1: i32) -> (i32, i32) {
    %c0_i32 = arith.constant 0 : i32
    %c0_i32_0 = arith.constant 0 : i32
    %c0_i32_1 = arith.constant 0 : i32
    return %c0_i32, %c0_i32_0 : i32, i32
  }
  func.func @transform_5(%arg0: i32, %arg1: i32) -> (i32, i32) {
    %c0_i32 = arith.constant 0 : i32
    %c0_i32_0 = arith.constant 0 : i32
    %c0_i32_1 = arith.constant 0 : i32
    return %c0_i32, %c0_i32_0 : i32, i32
  }
  func.func @transform_6(%arg0: i32, %arg1: i32) -> (i32, i32, i32, i32, i32) {
    %c0_i32 = arith.constant 0 : i32
    %c0_i32_0 = arith.constant 0 : i32
    %c0_i32_1 = arith.constant 0 : i32
    %c0_i32_2 = arith.constant 0 : i32
    return %arg0, %arg1, %c0_i32, %c0_i32_0, %c0_i32_1 : i32, i32, i32, i32, i32
  }
}

module attributes {stable_mosaic.version = 11 : i64} {
  func.func @pool_kernel(%arg0: i32, %arg1: memref<4x4x2x4x256xf32, #tpu.memory_space<vmem>>, %arg2: memref<4x4x4x128xf32, #tpu.memory_space<vmem>>) attributes {dimension_semantics = [#tpu.dimension_semantics<parallel>], iteration_bounds = array<i64: 2>, scalar_prefetch = 0 : i64, scratch_operands = 0 : i64, tpu.core_type = #tpu.core_type<tc>, window_params = [{transform_indices = @transform_0, window_bounds = array<i64: 4, 4, 2, 4, 256>}, {transform_indices = @transform_1, window_bounds = array<i64: 4, 4, 4, 128>}]} {
    %c0 = arith.constant 0 : index
    %c0_0 = arith.constant 0 : index
    %c0_1 = arith.constant 0 : index
    %c0_2 = arith.constant 0 : index
    %c0_3 = arith.constant 0 : index
    %0 = vector.load %arg1[%c0, %c0_0, %c0_1, %c0_2, %c0_3] : memref<4x4x2x4x256xf32, #tpu.memory_space<vmem>>, vector<4x4x1x4x128xf32>
    %1 = vector.shape_cast %0 : vector<4x4x1x4x128xf32> to vector<4x4x4x128xf32>
    %c0_4 = arith.constant 0 : index
    %c0_5 = arith.constant 0 : index
    %c0_6 = arith.constant 0 : index
    %c0_7 = arith.constant 0 : index
    %c128 = arith.constant 128 : index
    %2 = vector.load %arg1[%c0_4, %c0_5, %c0_6, %c0_7, %c128] : memref<4x4x2x4x256xf32, #tpu.memory_space<vmem>>, vector<4x4x1x4x128xf32>
    %3 = vector.shape_cast %2 : vector<4x4x1x4x128xf32> to vector<4x4x4x128xf32>
    %c0_8 = arith.constant 0 : index
    %c0_9 = arith.constant 0 : index
    %c1 = arith.constant 1 : index
    %c0_10 = arith.constant 0 : index
    %c0_11 = arith.constant 0 : index
    %4 = vector.load %arg1[%c0_8, %c0_9, %c1, %c0_10, %c0_11] : memref<4x4x2x4x256xf32, #tpu.memory_space<vmem>>, vector<4x4x1x4x128xf32>
    %5 = vector.shape_cast %4 : vector<4x4x1x4x128xf32> to vector<4x4x4x128xf32>
    %c0_12 = arith.constant 0 : index
    %c0_13 = arith.constant 0 : index
    %c1_14 = arith.constant 1 : index
    %c0_15 = arith.constant 0 : index
    %c128_16 = arith.constant 128 : index
    %6 = vector.load %arg1[%c0_12, %c0_13, %c1_14, %c0_15, %c128_16] : memref<4x4x2x4x256xf32, #tpu.memory_space<vmem>>, vector<4x4x1x4x128xf32>
    %7 = vector.shape_cast %6 : vector<4x4x1x4x128xf32> to vector<4x4x4x128xf32>
    %8 = arith.maximumf %1, %3 : vector<4x4x4x128xf32>
    %cst = arith.constant 0.000000e+00 : f32
    %9 = vector.broadcast %cst : f32 to vector<4x4x1x128xf32>
    %10 = vector.extract_strided_slice %3 {offsets = [0, 0, 0, 0], sizes = [4, 4, 3, 128], strides = [1, 1, 1, 1]} : vector<4x4x4x128xf32> to vector<4x4x3x128xf32>
    %11 = tpu.concatenate %9, %10 in 2 : vector<4x4x1x128xf32>, vector<4x4x3x128xf32> -> vector<4x4x4x128xf32>
    %12 = arith.maximumf %8, %11 : vector<4x4x4x128xf32>
    %13 = arith.maximumf %5, %7 : vector<4x4x4x128xf32>
    %cst_17 = arith.constant 0.000000e+00 : f32
    %14 = vector.broadcast %cst_17 : f32 to vector<4x4x1x128xf32>
    %15 = vector.extract_strided_slice %7 {offsets = [0, 0, 0, 0], sizes = [4, 4, 3, 128], strides = [1, 1, 1, 1]} : vector<4x4x4x128xf32> to vector<4x4x3x128xf32>
    %16 = tpu.concatenate %14, %15 in 2 : vector<4x4x1x128xf32>, vector<4x4x3x128xf32> -> vector<4x4x4x128xf32>
    %17 = arith.maximumf %13, %16 : vector<4x4x4x128xf32>
    %18 = arith.maximumf %12, %17 : vector<4x4x4x128xf32>
    %cst_18 = arith.constant 0.000000e+00 : f32
    %19 = vector.broadcast %cst_18 : f32 to vector<4x1x4x128xf32>
    %20 = vector.extract_strided_slice %17 {offsets = [0, 0, 0, 0], sizes = [4, 3, 4, 128], strides = [1, 1, 1, 1]} : vector<4x4x4x128xf32> to vector<4x3x4x128xf32>
    %21 = tpu.concatenate %19, %20 in 1 : vector<4x1x4x128xf32>, vector<4x3x4x128xf32> -> vector<4x4x4x128xf32>
    %22 = arith.maximumf %18, %21 : vector<4x4x4x128xf32>
    %c0_19 = arith.constant 0 : index
    %c0_20 = arith.constant 0 : index
    %c0_21 = arith.constant 0 : index
    %c0_22 = arith.constant 0 : index
    %23 = vector.load %arg2[%c0_19, %c0_20, %c0_21, %c0_22] : memref<4x4x4x128xf32, #tpu.memory_space<vmem>>, vector<4x4x4x128xf32>
    tpu.vector_store %arg2[%c0_19, %c0_20, %c0_21, %c0_22], %22 {strides = array<i32>} : memref<4x4x4x128xf32, #tpu.memory_space<vmem>>, vector<4x4x4x128xf32>,
    return
  }
  func.func @transform_0(%arg0: i32) -> (i32, i32, i32, i32, i32) {
    %c0_i32 = arith.constant 0 : i32
    %c0_i32_0 = arith.constant 0 : i32
    %c0_i32_1 = arith.constant 0 : i32
    %c0_i32_2 = arith.constant 0 : i32
    %c0_i32_3 = arith.constant 0 : i32
    return %arg0, %c0_i32, %c0_i32_0, %c0_i32_1, %c0_i32_2 : i32, i32, i32, i32, i32
  }
  func.func @transform_1(%arg0: i32) -> (i32, i32, i32, i32) {
    %c0_i32 = arith.constant 0 : i32
    %c0_i32_0 = arith.constant 0 : i32
    %c0_i32_1 = arith.constant 0 : i32
    %c0_i32_2 = arith.constant 0 : i32
    return %arg0, %c0_i32, %c0_i32_0, %c0_i32_1 : i32, i32, i32, i32
  }
}

</mosaic_0001>

<bundles_post_ra>
// kernel: resnet_basic_stem_forward.2
= control target key start
LH: loop header
LB: loop body
LE: loop exit
PB: predicated region body
PF: predicated region fallthrough
CT: control target
= control target key end

     0   :  { %s1326_s21 = smov 0   ;;  %s1328_s22 = smov 0   ;;  %s1553_s0 = inlined_call_operand.vmem [shape: f32[2,6,9,9,24], index: 0, kind: input, shape index: {}, may-alias: {0,1,2}]   ;;  %s1554_s1 = inlined_call_operand.vmem [shape: f32[2,6,9,9,24], index: 1, kind: input, shape index: {}, may-alias: {0,1,2}]   ;;  %s1555_s2 = inlined_call_operand.vmem [shape: f32[2,6,9,9,24], index: 2, kind: input, shape index: {}, may-alias: {0,1,2}]   ;;  %s1556_s3 = inlined_call_operand.vmem [shape: f32[6,24,128], index: 3, kind: input, shape index: {}]   ;;  %s1557_s4 = inlined_call_operand.vmem [shape: f32[1,128], index: 4, kind: input, shape index: {}]   ;;  %s1558_s5 = inlined_call_operand.vmem [shape: f32[1,128], index: 5, kind: input, shape index: {}]   ;;  %s1559_s6 = inlined_call_operand.vmem [shape: f32[2,4,8,8,128], index: 6, kind: output, shape index: {}]  }
   0x1   :  { %1560 = sst [smem:[#allocation2_spill]] %s1553_s0  ;;  %s1330_s23 = smov 0  }
   0x2   :  { %1561 = sst [smem:[#allocation3_spill]] %s1556_s3  ;;  %s1332_s24 = smov 0  }
   0x3   :  { %s1334_s25 = smov 0  }
   0x4 LB: > { %s25_s26 = sadd.s32 1, %s1274_s23  ;;  %s28_s27 = sadd.s32 1, %s1278_s24  ;;  %s1282_s25 = sphi %s1334_s25, %s16_s25   ;;  %s1278_s24 = sphi %s1332_s24, %s1567_s24   ;;  %s1274_s23 = sphi %s1330_s23, %s1566_s23   ;;  %s1270_s22 = sphi %s1328_s22, %s1565_s22   ;;  %s1266_s21 = sphi %s1326_s21, %s1564_s21  }
   0x5   : > { %p26_p0 = scmp.ge.s32.totalorder %s25_s26, 4  ;;  %p1040_p1 = scmp.ge.s32.totalorder %s1282_s25, 1 }
   0x6   : > { %p272_p2 = scmp.lt.s32.totalorder %s1282_s25, 9 }
   0x7   : > { %s1569_s26 = smov (%p26_p0, %s25_s26), 0  ;;  %s1571_s27 = smov (!%p26_p0, %s28_s27), %s1278_s24 }
   0x8   : > { %p273_p3 = pnand %p1040_p1, %p272_p2  ;;  %p30_p4 = scmp.ge.s32.totalorder %s1571_s27, 2 }
   0x9   : > { %p330_p5 = scmp.lt.s32.totalorder (!%p273_p3), %s1270_s22, 1  ;;  %p332_p6 = scmp.lt.s32.totalorder (!%p273_p3), %s1266_s21, 5  ;;  %v1362_v0 = vld [vmem:[%s1557_s4] ss:$0 sm:$0xff] (!%p273_p3) }
   0xa   : > { %s1573_s27 = smov (%p30_p4, %s1571_s27), 0  ;;  %276 = sbr.rel (%p273_p3) target bundleno = 275 (0x113), region = 44 }
   0xb   : > { %v1367_v1 = vld [vmem:[%s1558_s5] ss:$0 sm:$0xff] (!%p273_p3)  ;;  %s339_s8 = sadd.s32 (!%p273_p3), 1, %s1266_s21  ;;  %s1562_s3 = sld [smem:[#allocation3_spill]] (!%p273_p3) }
   0xc   : > { %p342_p7 = scmp.lt.s32.totalorder (!%p273_p3), %s339_s8, 5  ;;  %s350_s20 = sadd.s32 (!%p273_p3), 2, %s1266_s21 }
   0xd   : > { %s1563_s0 = sld [smem:[#allocation2_spill]] (!%p273_p3)  ;;  %p353_p8 = scmp.lt.s32.totalorder (!%p273_p3), %s350_s20, 5 }
   0xe   : > { %p363_p9 = scmp.lt.s32.totalorder (!%p273_p3), %s1266_s21, 3 }
  0x11   : > { %v1373_v2 = vld [vmem:[%s1562_s3] sm:$0xff]  ;;  %v1378_v3 = vld [vmem:[%s1562_s3 + $0x8] sm:$0xff]  ;;  %v1383_v4 = vld [vmem:[%s1562_s3 + $0x10] sm:$0xff]  ;;  %s1575_s22 = smov (!%p330_p5, %s1270_s22), 1  ;;  %s1577_s8 = smov (!%p342_p7, %s339_s8), 5 }
  0x12   : > { %v1390_v5 = vld [vmem:[%s1562_s3 + $0x18] sm:$0xff]  ;;  %v1395_v6 = vld [vmem:[%s1562_s3 + $0x20] sm:$0xff]  ;;  %v1400_v7 = vld [vmem:[%s1562_s3 + $0x28] sm:$0xff]  ;;  %s333_s28 = scalar_select %p332_p6, %s1266_s21, 5 }
  0x13   : > { %v1406_v8 = vld [vmem:[%s1562_s3 + $0x30] sm:$0xff]  ;;  %v1411_v9 = vld [vmem:[%s1562_s3 + $0x38] sm:$0xff]  ;;  %v1416_v10 = vld [vmem:[%s1562_s3 + $0x40] sm:$0xff]  ;;  %s1186_s12 = smul.u32 108, %s1575_s22  ;;  %s1045_s16 = sshll.u32 %s1575_s22, 5 }
  0x14   : > { %v1422_v11 = vld [vmem:[%s1562_s3 + $0x48] sm:$0xff]  ;;  %v1427_v12 = vld [vmem:[%s1562_s3 + $0x50] sm:$0xff]  ;;  %v1432_v13 = vld [vmem:[%s1562_s3 + $0x58] sm:$0xff]  ;;  %s1185_s19 = smul.u32 18, %s333_s28  ;;  %s1579_s20 = smov (!%p353_p8, %s350_s20), 5 }
  0x15   : > { %v1438_v14 = vld [vmem:[%s1562_s3 + $0x60] sm:$0xff]  ;;  %v1443_v15 = vld [vmem:[%s1562_s3 + $0x68] sm:$0xff]  ;;  %v1448_v16 = vld [vmem:[%s1562_s3 + $0x70] sm:$0xff]  ;;  %s1187_s30 = smul.u32 18, %s1577_s8  ;;  %s1581_s21 = smov (!%p363_p9, %s1266_s21), 3 }
  0x16   : > { %v1453_v17 = vld [vmem:[%s1562_s3 + $0x78] sm:$0xff]  ;;  %v1458_v18 = vld [vmem:[%s1562_s3 + $0x80] sm:$0xff]  ;;  %v1463_v19 = vld [vmem:[%s1562_s3 + $0x88] sm:$0xff]  ;;  %s336_s18 = sadd.s32 %s1186_s12, %s1185_s19  ;;  %s1188_s19 = smul.u32 18, %s1579_s20 }
  0x17   : > { %s1041_s29 = sshll.u32 %s336_s18, 3  ;;  %s346_s11 = sadd.s32 %s1187_s30, %s1186_s12 }
  0x18   : > { %s1468_s10 = scalar_lea.vmem %s1563_s0, %s1041_s29  ;;  %s1042_s28 = sshll.u32 %s346_s11, 3 }
  0x19   : > { %s1474_s15 = scalar_lea.vmem %s1554_s1, %s1042_s28  ;;  %s1044_s17 = sshll.u32 %s1581_s21, 3 }
  0x1a   : > { %s357_s8 = sadd.s32 %s1188_s19, %s1186_s12  ;;  %s367_s18 = sadd.s32 %s1045_s16, %s1044_s17 }
  0x1b   : > { %s1043_s3 = sshll.u32 %s357_s8, 3  ;;  %s1046_s7 = sshll.u32 %s367_s18, 3 }
  0x1c   : > { %s1481_s30 = scalar_lea.vmem %s1555_s2, %s1043_s3  ;;  %s1486_s13 = scalar_lea.vmem %s1559_s6, %s1046_s7 }
  0x1d   : > { %s1488_s28 = smov 0  }
  0x1e LB: >> { %v1159_v20 = vpack.c.bf16 %v1395_v6, %v1390_v5  ;;  %v1168_v21 = vpack.c.bf16 %v1427_v12, %v1422_v11  ;;  %v1288_v22 = vmov 0.0|0.0   ;;  %s1062_s0 = sshll.u32 %s1286_s28, 4  ;;  %v1289_v23 = vmov 0.0   ;;  %s1077_s12 = sshll.u32 %s1286_s28, 3  ;;  %s1286_s28 = sphi %s1488_s28, %s400_s28  }
  0x1f   : >> { %1158 = vmatprep.subr.bf16.mxu1 %v1288_v22  ;;  %1167 = vmatprep.subr.bf16.mxu0 %v1288_v22  ;;  %s402_s3 = scalar_lea.vmem %s1468_s10, %s1062_s0  ;;  %s1500_s21 = scalar_lea.vmem %s1474_s15, %s1062_s0  ;;  %vm1290_vm0 = vmmov 0   ;;  %vm408_vm1 = vcmask 195584   ;;  %v1162_v26 = vpack.c.bf16 %v1378_v3, %v1373_v2  ;;  %v1171_v27 = vpack.c.bf16 %v1443_v15, %v1438_v14 }
  0x20   : >> { %1160 = vmatpush3.bf16.msra.mxu1 %v1159_v20  ;;  %1169 = vmatpush3.bf16.msra.mxu0 %v1168_v21  ;;  %v1064_v24 = vld [vmem:[%s402_s3 + $0x10] sm:$0xff]  ;;  %s707_s22 = scalar_lea.vmem %s1481_s30, %s1062_s0  ;;  %v403_v28 = vld [vmem:[%s402_s3] sm:$0xff]  ;;  %v1165_v29 = vpack.c.bf16 %v1411_v9, %v1406_v8  ;;  %v1174_v31 = vpack.c.bf16 %v1458_v18, %v1453_v17  ;;  %s875_s20 = scalar_lea.vmem %s1486_s13, %s1077_s12 }
  0x21   : >> { %1108 = vmatprep.subr.mxu1 %v1289_v23  ;;  %1135 = vmatprep.subr.mxu0 %v1289_v23  ;;  %v1069_v25 = vld [vmem:[%s1500_s21 + $0x10] sm:$0xff]  ;;  %v708_v30 = vld [vmem:[%s707_s22] sm:$0xff]  ;;  %s400_s28 = sadd.s32 1, %s1286_s28  }
  0x22   : >> { %1110 = vmatprep.mubr.msk.f32.mxu1 %vm1290_vm0, %v1289_v23  ;;  %1137 = vmatprep.mubr.msk.f32.mxu0 %vm1290_vm0, %v1289_v23  ;;  %v556_v32 = vld [vmem:[%s1500_s21] sm:$0xff]  ;;  %v1073_v33 = vld [vmem:[%s707_s22 + $0x10] sm:$0xff]  ;;  %p397_p10 = scmp.ge.s32.totalorder %s400_s28, 8  }
  0x24   : >> { %1109 = vmatpush3.msra.mxu1 %v1400_v7  ;;  %1136 = vmatpush3.msra.mxu0 %v1432_v13 }
  0x25   : >> { %1111 = vmatmul.mubr.msk.f32.vlgmr.msra.gmra.mrb[0].mxu1 %vm408_vm1, %v1064_v24  ;;  %1161 = vmatprep.subr.bf16.mxu1 %v1288_v22 }
  0x26   : >> { %1138 = vmatmul.mubr.msk.f32.vlgmr.msra.gmra.mrb[0].mxu0 %vm408_vm1, %v1069_v25  ;;  %1170 = vmatprep.subr.bf16.mxu0 %v1288_v22 }
  0x27   : >> { %1163 = vmatpush3.bf16.msra.mxu1 %v1162_v26  ;;  %1172 = vmatpush3.bf16.msra.mxu0 %v1171_v27 }
  0x28   : >> { %1117 = vmatprep.subr.mxu1 %v1289_v23  ;;  %1144 = vmatprep.subr.mxu0 %v1289_v23 }
  0x29   : >> { %1119 = vmatprep.mubr.msk.f32.mxu1 %vm1290_vm0, %v1289_v23  ;;  %1146 = vmatprep.mubr.msk.f32.mxu0 %vm1290_vm0, %v1289_v23 }
  0x2b   : >> { %1118 = vmatpush3.msra.mxu1 %v1383_v4  ;;  %1145 = vmatpush3.msra.mxu0 %v1448_v16 }
  0x2c   : >> { %1164 = vmatprep.subr.bf16.mxu1 %v1288_v22  ;;  %1173 = vmatprep.subr.bf16.mxu0 %v1288_v22 }
  0x2d   : >> { %1120 = vmatmul.mubr.msk.f32.vlgmr.msra.gmra.mrb[0].mxu1 %vm408_vm1, %v403_v28 }
  0x2e   : >> { %1147 = vmatmul.mubr.msk.f32.vlgmr.msra.gmra.mrb[0].mxu0 %vm408_vm1, %v708_v30  ;;  %1166 = vmatpush3.bf16.msra.mxu1 %v1165_v29 }
  0x2f   : >> { %1175 = vmatpush3.bf16.msra.mxu0 %v1174_v31  ;;  %1126 = vmatprep.subr.mxu1 %v1289_v23 }
  0x30   : >> { %1153 = vmatprep.subr.mxu0 %v1289_v23  ;;  %1128 = vmatprep.mubr.msk.f32.mxu1 %vm1290_vm0, %v1289_v23 }
  0x31   : >> { %1155 = vmatprep.mubr.msk.f32.mxu0 %vm1290_vm0, %v1289_v23 }
  0x32   : >> { %1127 = vmatpush3.msra.mxu1 %v1416_v10 }
  0x33   : >> { %1154 = vmatpush3.msra.mxu0 %v1463_v19 }
  0x35   : >> { %1129 = vmatmul.mubr.msk.f32.vlgmr.msra.gmra.mrb[0].mxu1 %vm408_vm1, %v556_v32 }
  0x36   : >> { %1156 = vmatmul.mubr.msk.f32.vlgmr.msra.gmra.mrb[0].mxu0 %vm408_vm1, %v1073_v33 }
 0x108   : >> { %v626_v34 = vpop.f32.mrb[0].mxu1 }
 0x109   : >> { %v854_v35 = vpop.f32.mrb[0].mxu0  ;;  %v1130_v36 = vpop.f32.mrb[1].mxu1 }
 0x10a   : >> { %v1176_v37 = vadd.f32 %v854_v35, %v626_v34  ;;  %v1157_v38 = vpop.f32.mrb[1].mxu0 }
 0x10c   : >> { %v865_v39 = vmul.f32 %v1176_v37, %v1362_v0  ;;  %399 = sbr.rel (!%p397_p10) target bundleno = 30 (0x1e), region = 99 }
 0x10e   : >> { %v872_v40 = vadd.f32 %v1367_v1, %v865_v39 }
 0x110   : >> { %v873_v41 = vmax.f32 %v872_v40, 0.0 }
 0x112   : >> { %876 = vst [vmem:[%s875_s20] sm:$0xff] %v873_v41 }
 0x113 PF: > { %s16_s25 = sadd.s32 1, %s1282_s25   ;;  %s1564_s21 = smov %s1274_s23 }
 0x114   : > { %p13_p11 = scmp.ge.s32.totalorder %s16_s25, 10   ;;  %s1565_s22 = smov %s1278_s24 }
 0x115   : > { %s1566_s23 = smov %s1569_s26  ;;  %s1567_s24 = smov %s1573_s27 }
 0x116   :  { %15 = sbr.rel (!%p13_p11) target bundleno = 4 (0x4), region = 110 }

// kernel: resnet_basic_stem_forward.3
= control target key start
LH: loop header
LB: loop body
LE: loop exit
PB: predicated region body
PF: predicated region fallthrough
CT: control target
= control target key end

     0   :  { %6 = vsyncpa [#allocation3], 0  ;;  %s897_s0 = inlined_call_operand.vmem [shape: f32[8,4,2,4,256], index: 0, kind: input, shape index: {}]   ;;  %s898_s1 = inlined_call_operand.hbm [shape: f32[8,4,4,128], index: 1, kind: output, shape index: {}]  }
   0x1   :  { %8 = vsyncpa [#allocation3 + $0x1], 0  ;;  %s671_s6 = smov 0   ;;  %s673_s7 = smov 0  }
   0x2   :  { %s675_s8 = smov 0   ;;  %s677_s9 = smov 0  }
   0x3 LB: > { %s692_s10 = sadd.s32 4294967295, %s656_s9   ;;  %s504_s11 = sadd.s32 4294967294, %s656_s9   ;;  %s656_s9 = sphi %s677_s9, %s904_s9   ;;  %s652_s8 = sphi %s675_s8, %s903_s8   ;;  %s648_s7 = sphi %s673_s7, %s902_s7   ;;  %s644_s6 = sphi %s671_s6, %s901_s6  }
   0x4   : > { %s696_s12 = sadd.s32 1, %s656_s9   ;;  %s47_s13 = sadd.s32 1, %s652_s8 }
   0x5   : > { %s44_s14 = ssub.s32 %s656_s9, %s696_s12  ;;  %p57_p0 = scmp.ne.s32.totalorder %s652_s8, %s648_s7 }
   0x6   : > { %p45_p1 = scmp.eq.s32.totalorder %s44_s14, 0  ;;  %p58_p2 = scmp.eq.s32.totalorder %s692_s10, 1 }
   0x7   : > { %p63_p3 = scmp.ne.s32.totalorder %s648_s7, %s644_s6  ;;  %p64_p4 = scmp.eq.s32.totalorder %s504_s11, 1 }
   0x8   : > { %s707_s15 = scalar_select %p45_p1, %s652_s8, %s47_s13  }
   0x9   : > { %p709_p5 = por %p58_p2, %p57_p0  ;;  %p713_p6 = por %p64_p4, %p63_p3 }
   0xa   : > { %p507_p7 = scmp.ge.s32.totalorder %s656_s9, 1  ;;  %p92_p8 = scmp.lt.s32.totalorder %s656_s9, 3 }
   0xc   : > { %p93_p9 = pnand %p507_p7, %p92_p8 }
   0xd   : > { %s509_s18 = sshll.u32 (!%p93_p9), %s692_s10, 2  ;;  %s110_s20 = sand.u32 (!%p93_p9), 1, %s648_s7   ;;  %vm250_vm0 = vcmask (!%p93_p9), 1040384  }
   0xe   : > { %96 = sbr.rel (%p93_p9) target bundleno = 87 (0x57), region = 24  ;;  %p114_p10 = scmp.lt.s32.totalorder (!%p93_p9), %s509_s18, 7 }
   0xf   : > { %s733_s24 = sshll.u32 (!%p93_p9), %s110_s20, 6  ;;  %s552_s26 = sshll.u32 (!%p93_p9), %s692_s10, 10 }
  0x10   : > { %s761_s25 = scalar_lea.vmem (!%p93_p9), [#allocation2], %s733_s24  ;;  %s849_s30 = scalar_lea.hbm (!%p93_p9), %s898_s1, %s552_s26 }
  0x11   : > { %s442_s27 = sshll.u32 (!%p93_p9), %s761_s25, 4  ;;  %s856_s2 = scalar_lea.sflag (!%p93_p9), [#allocation3], %s110_s20  ;;  %s851_s27 = int_to_ptr.vmem [resolvable:$true] %s442_s27 }
  0x12   : > { %s594_s3 = scalar_lea.vmem (!%p93_p9), %s851_s27, 1024  ;;  %s658_s4 = smov (!%p93_p9), [#allocation2]  }
  0x13   : > { %p595_p11 = scmp.ne.s32.totalorder (!%p93_p9), %s851_s27, %s594_s3  ;;  %s598_s5 = sshll.u32 (!%p93_p9), %s658_s4, 4  ;;  %s599_s5 = int_to_ptr.vmem [resolvable:$false] %s598_s5 }
  0x14   : > { %s600_s10 = scalar_lea.vmem (!%p93_p9), %s599_s5, 2048  ;;  %p601_p0 = scmp.lt.s32.totalorder (!%p93_p9), %s851_s27, %s599_s5 }
  0x15   : > { %s906_s18 = smov (!%p114_p10, %s509_s18), 7  ;;  %p596_p12 = pnand %p595_p11, %p709_p5 }
  0x16   : > { %s550_s19 = sshll.u32 %s906_s18, 6  ;;  %p602_p1 = scmp.lt.s32.totalorder %s600_s10, %s594_s3 }
  0x17   : > { %s724_s23 = scalar_lea.vmem %s897_s0, %s550_s19  ;;  %p597_p13 = pneg %p596_p12 }
  0x18   : > { %v121_v0 = vld [vmem:[%s724_s23] sm:$0xf]  ;;  %v137_v1 = vld [vmem:[%s724_s23 + $0x4] sm:$0xf]  ;;  %v512_v2 = vld [vmem:[%s724_s23 + $0x8] sm:$0xf]  ;;  %p603_p2 = por %p602_p1, %p601_p0 }
  0x19   : > { %v528_v3 = vld [vmem:[%s724_s23 + $0xc] sm:$0xf]  ;;  %v186_v4 = vmax.f32 %v121_v0, %v137_v1  ;;  %v218_v5 = vrot.slane %v137_v1, 7  ;;  %v122_v6 = vld [vmem:[%s724_s23 + $0x10] sm:$0xf] }
  0x1a   : > { %v283_v7 = vmax.f32 %v512_v2, %v528_v3  ;;  %v315_v8 = vrot.slane %v528_v3, 7  ;;  %v138_v9 = vld [vmem:[%s724_s23 + $0x14] sm:$0xf]  ;;  %v513_v10 = vld [vmem:[%s724_s23 + $0x18] sm:$0xf]  ;;  %p604_p3 = pnand %p603_p2, %p597_p13 }
  0x1b   : > { %v251_v11 = vsel %vm250_vm0, 0.0, %v218_v5  ;;  %v529_v12 = vld [vmem:[%s724_s23 + $0x1c] sm:$0xf]  ;;  %v187_v13 = vmax.f32 %v122_v6, %v138_v9  ;;  %v219_v14 = vrot.slane %v138_v9, 7  ;;  %v123_v15 = vld [vmem:[%s724_s23 + $0x20] sm:$0xf] }
  0x1c   : > { %v267_v16 = vmax.f32 %v186_v4, %v251_v11  ;;  %v347_v17 = vsel %vm250_vm0, 0.0, %v315_v8  ;;  %v284_v18 = vmax.f32 %v513_v10, %v529_v12  ;;  %v316_v19 = vrot.slane %v529_v12, 7  ;;  %v139_v20 = vld [vmem:[%s724_s23 + $0x24] sm:$0xf]  ;;  %v514_v21 = vld [vmem:[%s724_s23 + $0x28] sm:$0xf] }
  0x1d   : > { %v363_v22 = vmax.f32 %v283_v7, %v347_v17  ;;  %v252_v23 = vsel %vm250_vm0, 0.0, %v219_v14  ;;  %v530_v24 = vld [vmem:[%s724_s23 + $0x2c] sm:$0xf]  ;;  %v188_v25 = vmax.f32 %v123_v15, %v139_v20  ;;  %v220_v26 = vrot.slane %v139_v20, 7  ;;  %v124_v27 = vld [vmem:[%s724_s23 + $0x30] sm:$0xf] }
  0x1e   : > { %v268_v28 = vmax.f32 %v187_v13, %v252_v23  ;;  %v348_v29 = vsel %vm250_vm0, 0.0, %v316_v19  ;;  %v285_v30 = vmax.f32 %v514_v21, %v530_v24  ;;  %v317_v31 = vrot.slane %v530_v24, 7  ;;  %v140_v32 = vld [vmem:[%s724_s23 + $0x34] sm:$0xf]  ;;  %v515_v33 = vld [vmem:[%s724_s23 + $0x38] sm:$0xf] }
  0x1f   : > { %v379_v34 = vmax.f32 %v267_v16, %v363_v22  ;;  %v364_v35 = vmax.f32 %v284_v18, %v348_v29  ;;  %v253_v36 = vsel %vm250_vm0, 0.0, %v220_v26  ;;  %v531_v37 = vld [vmem:[%s724_s23 + $0x3c] sm:$0xf]  ;;  %v189_v38 = vmax.f32 %v124_v27, %v140_v32  ;;  %v125_v39 = vld [vmem:[%s724_s23 + $0x40] sm:$0xf] }
  0x20   : > { %v269_v40 = vmax.f32 %v188_v25, %v253_v36  ;;  %v349_v41 = vsel %vm250_vm0, 0.0, %v317_v31  ;;  %v221_v42 = vrot.slane %v140_v32, 7  ;;  %v286_v43 = vmax.f32 %v515_v33, %v531_v37  ;;  %v141_v44 = vld [vmem:[%s724_s23 + $0x44] sm:$0xf]  ;;  %v516_v45 = vld [vmem:[%s724_s23 + $0x48] sm:$0xf] }
  0x21   : > { %v395_v46 = vmax.f32 %v379_v34, 0.0  ;;  %v380_v47 = vmax.f32 %v268_v28, %v364_v35  ;;  %v365_v48 = vmax.f32 %v285_v30, %v349_v41  ;;  %v318_v49 = vrot.slane %v531_v37, 7  ;;  %v532_v50 = vld [vmem:[%s724_s23 + $0x4c] sm:$0xf]  ;;  %v126_v51 = vld [vmem:[%s724_s23 + $0x50] sm:$0xf] }
  0x22   : > { %v254_v52 = vsel %vm250_vm0, 0.0, %v221_v42  ;;  %v190_v53 = vmax.f32 %v125_v39, %v141_v44  ;;  %v222_v54 = vrot.slane %v141_v44, 7  ;;  %v287_v55 = vmax.f32 %v516_v45, %v532_v50  ;;  %v142_v56 = vld [vmem:[%s724_s23 + $0x54] sm:$0xf]  ;;  %v517_v57 = vld [vmem:[%s724_s23 + $0x58] sm:$0xf] }
  0x23   : > { %411 = vst [vmem:[%s761_s25] sm:$0xf] %v395_v46  ;;  %v396_v58 = vmax.f32 %v380_v47, %v363_v22  ;;  %v381_v59 = vmax.f32 %v269_v40, %v365_v48  ;;  %v270_v60 = vmax.f32 %v189_v38, %v254_v52  ;;  %v350_v61 = vsel %vm250_vm0, 0.0, %v318_v49  ;;  %v533_v62 = vld [vmem:[%s724_s23 + $0x5c] sm:$0xf]  ;;  %v127_v63 = vld [vmem:[%s724_s23 + $0x60] sm:$0xf] }
  0x24   : > { %v366_v0 = vmax.f32 %v286_v43, %v350_v61  ;;  %v255_v1 = vsel %vm250_vm0, 0.0, %v222_v54  ;;  %v319_v2 = vrot.slane %v532_v50, 7  ;;  %v191_v3 = vmax.f32 %v126_v51, %v142_v56  ;;  %v143_v4 = vld [vmem:[%s724_s23 + $0x64] sm:$0xf]  ;;  %v518_v5 = vld [vmem:[%s724_s23 + $0x68] sm:$0xf] }
  0x25   : > { %412 = vst [vmem:[%s761_s25 + $0x4] sm:$0xf] %v396_v58  ;;  %v397_v6 = vmax.f32 %v381_v59, %v364_v35  ;;  %v271_v7 = vmax.f32 %v190_v53, %v255_v1  ;;  %v223_v8 = vrot.slane %v142_v56, 7  ;;  %v288_v9 = vmax.f32 %v517_v57, %v533_v62  ;;  %v534_v10 = vld [vmem:[%s724_s23 + $0x6c] sm:$0xf] }
  0x26   : > { %v382_v11 = vmax.f32 %v270_v60, %v366_v0  ;;  %v351_v12 = vsel %vm250_vm0, 0.0, %v319_v2  ;;  %v320_v13 = vrot.slane %v533_v62, 7  ;;  %v192_v14 = vmax.f32 %v127_v63, %v143_v4  ;;  %v128_v15 = vld [vmem:[%s724_s23 + $0x70] sm:$0xf]  ;;  %v144_v16 = vld [vmem:[%s724_s23 + $0x74] sm:$0xf] }
  0x27   : > { %413 = vst [vmem:[%s761_s25 + $0x8] sm:$0xf] %v397_v6  ;;  %v367_v17 = vmax.f32 %v287_v55, %v351_v12  ;;  %v256_v18 = vsel %vm250_vm0, 0.0, %v223_v8  ;;  %v224_v19 = vrot.slane %v143_v4, 7  ;;  %v289_v20 = vmax.f32 %v518_v5, %v534_v10  ;;  %v519_v21 = vld [vmem:[%s724_s23 + $0x78] sm:$0xf] }
  0x28   : > { %v535_v22 = vld [vmem:[%s724_s23 + $0x7c] sm:$0xf]  ;;  %v398_v23 = vmax.f32 %v382_v11, %v365_v48  ;;  %v272_v24 = vmax.f32 %v191_v3, %v256_v18  ;;  %v352_v25 = vsel %vm250_vm0, 0.0, %v320_v13  ;;  %v321_v26 = vrot.slane %v534_v10, 7  ;;  %v129_v27 = vld [vmem:[%s724_s23 + $0x80] sm:$0xf] }
  0x29   : > { %v145_v28 = vld [vmem:[%s724_s23 + $0x84] sm:$0xf]  ;;  %v383_v29 = vmax.f32 %v271_v7, %v367_v17  ;;  %v368_v30 = vmax.f32 %v288_v9, %v352_v25  ;;  %v257_v31 = vsel %vm250_vm0, 0.0, %v224_v19  ;;  %v193_v32 = vmax.f32 %v128_v15, %v144_v16  ;;  %v520_v33 = vld [vmem:[%s724_s23 + $0x88] sm:$0xf] }
  0x2a   : > { %v536_v34 = vld [vmem:[%s724_s23 + $0x8c] sm:$0xf]  ;;  %414 = vst [vmem:[%s761_s25 + $0xc] sm:$0xf] %v398_v23  ;;  %v273_v35 = vmax.f32 %v192_v14, %v257_v31  ;;  %v353_v36 = vsel %vm250_vm0, 0.0, %v321_v26  ;;  %v225_v37 = vrot.slane %v144_v16, 7  ;;  %v290_v38 = vmax.f32 %v519_v21, %v535_v22 }
  0x2b   : > { %v399_v39 = vmax.f32 %v383_v29, 0.0  ;;  %v384_v40 = vmax.f32 %v272_v24, %v368_v30  ;;  %v369_v41 = vmax.f32 %v289_v20, %v353_v36  ;;  %v322_v42 = vrot.slane %v535_v22, 7  ;;  %v130_v43 = vld [vmem:[%s724_s23 + $0x90] sm:$0xf]  ;;  %v146_v44 = vld [vmem:[%s724_s23 + $0x94] sm:$0xf] }
  0x2c   : > { %v258_v45 = vsel %vm250_vm0, 0.0, %v225_v37  ;;  %v194_v46 = vmax.f32 %v129_v27, %v145_v28  ;;  %v226_v47 = vrot.slane %v145_v28, 7  ;;  %v291_v48 = vmax.f32 %v520_v33, %v536_v34  ;;  %v521_v49 = vld [vmem:[%s724_s23 + $0x98] sm:$0xf]  ;;  %v537_v50 = vld [vmem:[%s724_s23 + $0x9c] sm:$0xf] }
  0x2d   : > { %415 = vst [vmem:[%s761_s25 + $0x10] sm:$0xf] %v399_v39  ;;  %v400_v51 = vmax.f32 %v384_v40, %v367_v17  ;;  %v385_v52 = vmax.f32 %v273_v35, %v369_v41  ;;  %v274_v53 = vmax.f32 %v193_v32, %v258_v45  ;;  %v354_v54 = vsel %vm250_vm0, 0.0, %v322_v42  ;;  %v131_v55 = vld [vmem:[%s724_s23 + $0xa0] sm:$0xf] }
  0x2e   : > { %v147_v56 = vld [vmem:[%s724_s23 + $0xa4] sm:$0xf]  ;;  %v370_v57 = vmax.f32 %v290_v38, %v354_v54  ;;  %v259_v58 = vsel %vm250_vm0, 0.0, %v226_v47  ;;  %v323_v59 = vrot.slane %v536_v34, 7  ;;  %v195_v60 = vmax.f32 %v130_v43, %v146_v44  ;;  %v522_v61 = vld [vmem:[%s724_s23 + $0xa8] sm:$0xf] }
  0x2f   : > { %v538_v62 = vld [vmem:[%s724_s23 + $0xac] sm:$0xf]  ;;  %416 = vst [vmem:[%s761_s25 + $0x14] sm:$0xf] %v400_v51  ;;  %v401_v63 = vmax.f32 %v385_v52, %v368_v30  ;;  %v275_v0 = vmax.f32 %v194_v46, %v259_v58  ;;  %v227_v1 = vrot.slane %v146_v44, 7  ;;  %v292_v2 = vmax.f32 %v521_v49, %v537_v50 }
  0x30   : > { %v386_v3 = vmax.f32 %v274_v53, %v370_v57  ;;  %v355_v4 = vsel %vm250_vm0, 0.0, %v323_v59  ;;  %v324_v5 = vrot.slane %v537_v50, 7  ;;  %v196_v6 = vmax.f32 %v131_v55, %v147_v56  ;;  %v132_v7 = vld [vmem:[%s724_s23 + $0xb0] sm:$0xf]  ;;  %v148_v8 = vld [vmem:[%s724_s23 + $0xb4] sm:$0xf] }
  0x31   : > { %417 = vst [vmem:[%s761_s25 + $0x18] sm:$0xf] %v401_v63  ;;  %v371_v9 = vmax.f32 %v291_v48, %v355_v4  ;;  %v260_v10 = vsel %vm250_vm0, 0.0, %v227_v1  ;;  %v228_v11 = vrot.slane %v147_v56, 7  ;;  %v293_v12 = vmax.f32 %v522_v61, %v538_v62  ;;  %v523_v13 = vld [vmem:[%s724_s23 + $0xb8] sm:$0xf] }
  0x32   : > { %v539_v14 = vld [vmem:[%s724_s23 + $0xbc] sm:$0xf]  ;;  %v402_v15 = vmax.f32 %v386_v3, %v369_v41  ;;  %v276_v16 = vmax.f32 %v195_v60, %v260_v10  ;;  %v356_v17 = vsel %vm250_vm0, 0.0, %v324_v5  ;;  %v325_v18 = vrot.slane %v538_v62, 7  ;;  %v133_v19 = vld [vmem:[%s724_s23 + $0xc0] sm:$0xf] }
  0x33   : > { %v149_v20 = vld [vmem:[%s724_s23 + $0xc4] sm:$0xf]  ;;  %v387_v21 = vmax.f32 %v275_v0, %v371_v9  ;;  %v372_v22 = vmax.f32 %v292_v2, %v356_v17  ;;  %v261_v23 = vsel %vm250_vm0, 0.0, %v228_v11  ;;  %v197_v24 = vmax.f32 %v132_v7, %v148_v8  ;;  %v524_v25 = vld [vmem:[%s724_s23 + $0xc8] sm:$0xf] }
  0x34   : > { %v540_v26 = vld [vmem:[%s724_s23 + $0xcc] sm:$0xf]  ;;  %418 = vst [vmem:[%s761_s25 + $0x1c] sm:$0xf] %v402_v15  ;;  %v277_v27 = vmax.f32 %v196_v6, %v261_v23  ;;  %v357_v28 = vsel %vm250_vm0, 0.0, %v325_v18  ;;  %v229_v29 = vrot.slane %v148_v8, 7  ;;  %v294_v30 = vmax.f32 %v523_v13, %v539_v14 }
  0x35   : > { %v403_v31 = vmax.f32 %v387_v21, 0.0  ;;  %v388_v32 = vmax.f32 %v276_v16, %v372_v22  ;;  %v373_v33 = vmax.f32 %v293_v12, %v357_v28  ;;  %v326_v34 = vrot.slane %v539_v14, 7  ;;  %v134_v35 = vld [vmem:[%s724_s23 + $0xd0] sm:$0xf]  ;;  %v150_v36 = vld [vmem:[%s724_s23 + $0xd4] sm:$0xf] }
  0x36   : > { %v262_v37 = vsel %vm250_vm0, 0.0, %v229_v29  ;;  %v198_v38 = vmax.f32 %v133_v19, %v149_v20  ;;  %v230_v39 = vrot.slane %v149_v20, 7  ;;  %v295_v40 = vmax.f32 %v524_v25, %v540_v26  ;;  %v525_v41 = vld [vmem:[%s724_s23 + $0xd8] sm:$0xf]  ;;  %v541_v42 = vld [vmem:[%s724_s23 + $0xdc] sm:$0xf] }
  0x37   : > { %419 = vst [vmem:[%s761_s25 + $0x20] sm:$0xf] %v403_v31  ;;  %v404_v43 = vmax.f32 %v388_v32, %v371_v9  ;;  %v389_v44 = vmax.f32 %v277_v27, %v373_v33  ;;  %v278_v45 = vmax.f32 %v197_v24, %v262_v37  ;;  %v358_v46 = vsel %vm250_vm0, 0.0, %v326_v34  ;;  %v135_v47 = vld [vmem:[%s724_s23 + $0xe0] sm:$0xf] }
  0x38   : > { %v151_v48 = vld [vmem:[%s724_s23 + $0xe4] sm:$0xf]  ;;  %v374_v49 = vmax.f32 %v294_v30, %v358_v46  ;;  %v263_v50 = vsel %vm250_vm0, 0.0, %v230_v39  ;;  %v327_v51 = vrot.slane %v540_v26, 7  ;;  %v199_v52 = vmax.f32 %v134_v35, %v150_v36  ;;  %v526_v53 = vld [vmem:[%s724_s23 + $0xe8] sm:$0xf] }
  0x39   : > { %v542_v54 = vld [vmem:[%s724_s23 + $0xec] sm:$0xf]  ;;  %420 = vst [vmem:[%s761_s25 + $0x24] sm:$0xf] %v404_v43  ;;  %v405_v55 = vmax.f32 %v389_v44, %v372_v22  ;;  %v279_v56 = vmax.f32 %v198_v38, %v263_v50  ;;  %v231_v57 = vrot.slane %v150_v36, 7  ;;  %v296_v58 = vmax.f32 %v525_v41, %v541_v42 }
  0x3a   : > { %v390_v59 = vmax.f32 %v278_v45, %v374_v49  ;;  %v359_v60 = vsel %vm250_vm0, 0.0, %v327_v51  ;;  %v328_v61 = vrot.slane %v541_v42, 7  ;;  %v200_v62 = vmax.f32 %v135_v47, %v151_v48  ;;  %v136_v63 = vld [vmem:[%s724_s23 + $0xf0] sm:$0xf]  ;;  %v152_v0 = vld [vmem:[%s724_s23 + $0xf4] sm:$0xf] }
  0x3b   : > { %421 = vst [vmem:[%s761_s25 + $0x28] sm:$0xf] %v405_v55  ;;  %v375_v1 = vmax.f32 %v295_v40, %v359_v60  ;;  %v264_v2 = vsel %vm250_vm0, 0.0, %v231_v57  ;;  %v232_v3 = vrot.slane %v151_v48, 7  ;;  %v297_v4 = vmax.f32 %v526_v53, %v542_v54  ;;  %v527_v5 = vld [vmem:[%s724_s23 + $0xf8] sm:$0xf] }
  0x3c   : > { %v543_v6 = vld [vmem:[%s724_s23 + $0xfc] sm:$0xf]  ;;  %v406_v7 = vmax.f32 %v390_v59, %v373_v33  ;;  %v280_v8 = vmax.f32 %v199_v52, %v264_v2  ;;  %v360_v9 = vsel %vm250_vm0, 0.0, %v328_v61  ;;  %v329_v10 = vrot.slane %v542_v54, 7 }
  0x3d   : > { %v391_v11 = vmax.f32 %v279_v56, %v375_v1  ;;  %v376_v12 = vmax.f32 %v296_v58, %v360_v9  ;;  %v265_v13 = vsel %vm250_vm0, 0.0, %v232_v3  ;;  %v201_v14 = vmax.f32 %v136_v63, %v152_v0 }
  0x3e   : > { %422 = vst [vmem:[%s761_s25 + $0x2c] sm:$0xf] %v406_v7  ;;  %v281_v15 = vmax.f32 %v200_v62, %v265_v13  ;;  %v361_v16 = vsel %vm250_vm0, 0.0, %v329_v10  ;;  %v233_v17 = vrot.slane %v152_v0, 7  ;;  %v298_v18 = vmax.f32 %v527_v5, %v543_v6 }
  0x3f   : > { %v407_v19 = vmax.f32 %v391_v11, 0.0  ;;  %v392_v20 = vmax.f32 %v280_v8, %v376_v12  ;;  %v377_v21 = vmax.f32 %v297_v4, %v361_v16  ;;  %v330_v22 = vrot.slane %v543_v6, 7 }
  0x40   : > { %v266_v23 = vsel %vm250_vm0, 0.0, %v233_v17 }
  0x41   : > { %423 = vst [vmem:[%s761_s25 + $0x30] sm:$0xf] %v407_v19  ;;  %v408_v24 = vmax.f32 %v392_v20, %v375_v1  ;;  %v393_v25 = vmax.f32 %v281_v15, %v377_v21  ;;  %v282_v26 = vmax.f32 %v201_v14, %v266_v23  ;;  %v362_v27 = vsel %vm250_vm0, 0.0, %v330_v22 }
  0x42   : > { %v378_v28 = vmax.f32 %v298_v18, %v362_v27 }
  0x43   : > { %424 = vst [vmem:[%s761_s25 + $0x34] sm:$0xf] %v408_v24  ;;  %v409_v29 = vmax.f32 %v393_v25, %v376_v12 }
  0x44   : > { %v394_v30 = vmax.f32 %v282_v26, %v378_v28 }
  0x45   : > { %425 = vst [vmem:[%s761_s25 + $0x38] sm:$0xf] %v409_v29 }
  0x46   : > { %v410_v31 = vmax.f32 %v394_v30, %v377_v21 }
  0x48   : > { %426 = vst [vmem:[%s761_s25 + $0x3c] sm:$0xf] %v410_v31 }
  0x49   : > { %607 = shalt.err (!%p604_p3)
}
  0x4a   : > { %s608_s11 = scalar_lea.hbm %s849_s30, 1024  ;;  %s612_s18 = scalar_lea.hbm %s898_s1, 2048 }
  0x4b   : > { %p609_p4 = scmp.ne.s32.totalorder %s849_s30, %s608_s11  ;;  %p613_p9 = scmp.lt.u32.totalorder %s849_s30, %s898_s1 }
  0x4c   : > { %p614_p10 = scmp.lt.u32.totalorder %s612_s18, %s608_s11  ;;  %p616_p12 = scmp.lt.u32.totalorder %s608_s11, %s849_s30 }
  0x4d   : > { %p610_p7 = pnand %p609_p4, %p709_p5 }
  0x4e   : > { %p615_p11 = por %p614_p10, %p613_p9 }
  0x4f   : > { %p611_p8 = pneg %p610_p7 }
  0x50   : > { %p617_p13 = por %p616_p12, %p615_p11 }
  0x52   : > { %p618_p0 = pnand %p617_p13, %p611_p8 }
  0x54   : > { %621 = shalt.err (!%p618_p0)
}
  0x55   : > { %s659_s21 = smov 64   ;;  %s660_s22 = smov 4  }
  0x56   : > { %553 = dma.vmem_to_hbm [thread:$0]  (%p709_p5), %s851_s27, 1024, %s849_s30, %s856_s2, %s659_s21, %s659_s21, %s660_s22  }
  0x57 PF: > { %p559_p1 = scmp.ge.s32.totalorder %s656_s9, 2  ;;  %s457_s23 = sand.u32 1, %s644_s6  }
  0x58   : > { %s458_s24 = scalar_lea.sflag [#allocation3], %s457_s23 }
  0x59   : > { %p556_p2 = pnand %p559_p1, %p713_p6 }
  0x5b   : > { %639 = dma.done.wait (!%p556_p2), %s458_s24, 1024  }
  0x5c   : > { %641 = vsyncadd (!%p556_p2), %s458_s24, 4294966272  ;;  %p11_p3 = scmp.ge.s32.totalorder %s696_s12, 4   ;;  %s901_s6 = smov %s648_s7 }
  0x5d   : > { %s902_s7 = smov %s652_s8  ;;  %s903_s8 = smov %s707_s15 }
  0x5e   : > { %s904_s9 = smov %s696_s12  ;;  %13 = sbr.rel (!%p11_p3) target bundleno = 3 (0x3), region = 60 }
  0x65   :  { %463 = vsyncpa [#allocation3], 1 }
  0x66   :  { %465 = vsyncpa [#allocation3 + $0x1], 1 }

</bundles_post_ra>
